<compile_context>
chip_gen: v7x
topology: tpu7x:2x2x1
jax: 0.10.0
libtpu: 0.0.40
codegen_flags: <defaults>
</compile_context>

<pallas_src>
import math

import jax
import jax.numpy as jnp
from jax.experimental import pallas as pl
from jax.experimental.pallas import tpu as pltpu

EPS = 1e-4  # matches sihl.layers.bifpn EPS

_LANE_CANDIDATES = (4096, 2048, 1024, 512, 256, 128)


def _fusion_kernel(w_ref, *refs):
    """w_ref: SMEM (n,) pre-normalized f32 fusion weights.
    refs: n VMEM input tiles followed by one VMEM output tile."""
    in_refs = refs[:-1]
    out_ref = refs[-1]
    n = len(in_refs)
    acc = w_ref[0] * in_refs[0][...].astype(jnp.float32)
    for i in range(1, n):
        acc = acc + w_ref[i] * in_refs[i][...].astype(jnp.float32)
    out_ref[...] = acc.astype(out_ref.dtype)


def _round_up(x, m):
    return (x + m - 1) // m * m


def _vmem_capacity_bytes():
    """Physical per-core VMEM, with a conservative (v7x) fallback."""
    try:
        cap = getattr(pltpu.get_tpu_info(), "vmem_capacity_bytes", None)
        if cap:
            return int(cap)
    except Exception:
        pass
    return 64 << 20


def _pick_tile_r(rows, lanes, itemsize, block_bytes, min_block_bytes=512 << 10):
    """Row-tile that divides `rows` exactly, is a multiple of 8 (or == rows),
    and fits `block_bytes`.  Returns None if nothing reasonable divides."""
    max_tile_r = max(8, (block_bytes // (lanes * itemsize)) // 8 * 8)
    if rows <= max_tile_r:
        # Whole slab fits one block; split into >=2 blocks when possible so
        # both v7x TensorCores get work under dimension_semantics="parallel".
        for nb in (2, 3, 4):
            if rows % nb == 0 and (rows // nb) % 8 == 0:
                return rows // nb
        return rows
    min_tile_r = max(8, min(max_tile_r,
                            (min_block_bytes // (lanes * itemsize)) // 8 * 8))
    t = max_tile_r
    while t >= min_tile_r:
        if rows % t == 0:
            return t
        t -= 8
    return None


def _choose_layout(total, itemsize, block_bytes):
    """Return (lanes, rows, tile_r, padded_total); rows * lanes == padded_total."""
    divisible = [L for L in _LANE_CANDIDATES if total % L == 0]

    # Preferred path: no padding, >= 8 sublane rows, tile divides rows.
    for lanes in divisible:
        rows = total // lanes
        if rows < 8:
            continue
        tile_r = _pick_tile_r(rows, lanes, itemsize, block_bytes)
        if tile_r is not None:
            return lanes, rows, tile_r, total

    # Tiny arrays (rows < 8): single full-extent block, still no padding.
    for lanes in reversed(divisible):
        rows = total // lanes
        if rows < 8:
            return lanes, rows, rows, total

    # Last resort: pad the flattened slab up to a whole number of blocks.
    lanes = 128
    rows_raw = pl.cdiv(total, lanes)
    max_tile_r = max(8, (block_bytes // (lanes * itemsize)) // 8 * 8)
    if rows_raw >= 16 and _round_up(rows_raw, 8) <= max_tile_r:
        tile_r = _round_up(pl.cdiv(rows_raw, 2), 8)   # keep >= 2 grid steps
    else:
        tile_r = min(max_tile_r, _round_up(rows_raw, 8))
    num_blocks = pl.cdiv(rows_raw, tile_r)
    rows_padded = num_blocks * tile_r
    return lanes, rows_padded, tile_r, rows_padded * lanes


def fast_normalized_fusion(
    inputs,
    weights,
    *,
    target_block_bytes=8 << 20,   # ~8 MiB per-array block (amortizes ~0.35us/step)
):
    """inputs: list of identically shaped arrays (NCHW). weights: (num_inputs,)."""
    n = len(inputs)
    assert n >= 1 and weights.shape == (n,)
    shape = inputs[0].shape
    dtype = inputs[0].dtype
    for x in inputs:
        assert x.shape == shape and x.dtype == dtype
    itemsize = jnp.dtype(dtype).itemsize
    total = math.prod(shape)

    # Generation-aware VMEM budget: physical per-core VMEM minus headroom for
    # Mosaic internal scratch (v5e/v6e: ~112 MiB, v7x: ~48 MiB).
    cap = _vmem_capacity_bytes()
    vmem_budget = max(cap - (16 << 20), cap // 2)
    block_bytes = max(min(target_block_bytes, vmem_budget // (2 * (n + 1))),
                      128 << 10)

    lanes, rows, tile_r, padded_total = _choose_layout(total, itemsize, block_bytes)
    num_blocks = rows // tile_r

    def to_slab(x):
        flat = x.reshape(-1)
        if padded_total != total:
            flat = jnp.pad(flat, (0, padded_total - total))
        return flat.reshape(rows, lanes)

    flat_inputs = [to_slab(x) for x in inputs]

    # Normalized fusion weights computed once in the wrapper (touches only the
    # n scalars, not the tensors) -> kernel body is pure weighted adds.
    w = jnp.maximum(weights.astype(jnp.float32), 0.0)
    w_norm = w / (jnp.sum(w) + jnp.float32(EPS))

    data_spec = pl.BlockSpec((tile_r, lanes), lambda i: (i, 0))
    in_specs = [pl.BlockSpec(memory_space=pltpu.MemorySpace.SMEM)] + [data_spec] * n

    # Double-buffered footprint in the actual input dtype; leave headroom below
    # physical VMEM (never request the full 64 MiB on v7x).
    footprint = 2 * (n + 1) * tile_r * lanes * itemsize
    vmem_limit = int(min(max(footprint + (4 << 20), 16 << 20), cap - (8 << 20)))

    out_flat = pl.pallas_call(
        _fusion_kernel,
        out_shape=jax.ShapeDtypeStruct((rows, lanes), dtype),
        grid=(num_blocks,),
        in_specs=in_specs,
        out_specs=data_spec,
        compiler_params=pltpu.CompilerParams(
            dimension_semantics=("parallel",),
            vmem_limit_bytes=vmem_limit,
        ),
    )(w_norm, *flat_inputs)

    out = out_flat.reshape(-1)
    if padded_total != total:
        out = out[:total]
    return out.reshape(shape)


def fast_normalized_fusion_ref(inputs, weights):
    w = jnp.maximum(weights.astype(jnp.float32), 0.0)
    w = w / (w.sum() + EPS)
    acc = jnp.zeros(inputs[0].shape, jnp.float32)
    for i in range(len(inputs)):
        acc = acc + w[i] * inputs[i].astype(jnp.float32)
    return acc.astype(inputs[0].dtype)


if __name__ == "__main__":
    key = jax.random.PRNGKey(0)
    B, C, H, W = 2, 4, 16, 16  # NCHW

    k1, k2, k3, k4, k5, k6, k7 = jax.random.split(key, 7)

    # Case 1: default module config (num_inputs=2, torch.ones init), f32.
    x0 = jax.random.normal(k1, (B, C, H, W), dtype=jnp.float32)
    x1 = jax.random.normal(k2, (B, C, H, W), dtype=jnp.float32)
    w2 = jnp.ones((2,), dtype=jnp.float32)  # nn.Parameter(torch.ones(num_inputs))
    out = jax.block_until_ready(fast_normalized_fusion([x0, x1], w2))
    ref = fast_normalized_fusion_ref([x0, x1], w2)
    assert out.shape == (B, C, H, W)
    assert jnp.allclose(out, ref, atol=1e-5, rtol=1e-5), "mismatch (2-input f32)"

    # Case 2: misaligned shape -> exercises the padding fallback path.
    y0 = jax.random.normal(k3, (2, 3, 5, 7), dtype=jnp.float32)
    y1 = jax.random.normal(k4, (2, 3, 5, 7), dtype=jnp.float32)
    out2 = jax.block_until_ready(fast_normalized_fusion([y0, y1], w2))
    ref2 = fast_normalized_fusion_ref([y0, y1], w2)
    assert out2.shape == (2, 3, 5, 7)
    assert jnp.allclose(out2, ref2, atol=1e-5, rtol=1e-5), "mismatch (padded)"

    # Case 3: 3 inputs, bf16 -> exercises itemsize-aware tiling and >2 inputs.
    z0 = jax.random.normal(k5, (B, C, H, W), dtype=jnp.bfloat16)
    z1 = jax.random.normal(k6, (B, C, H, W), dtype=jnp.bfloat16)
    z2 = jax.random.normal(k7, (B, C, H, W), dtype=jnp.bfloat16)
    w3 = jnp.ones((3,), dtype=jnp.float32)
    out3 = jax.block_until_ready(fast_normalized_fusion([z0, z1, z2], w3))
    ref3 = fast_normalized_fusion_ref([z0, z1, z2], w3)
    assert out3.shape == (B, C, H, W)
    assert jnp.allclose(out3.astype(jnp.float32), ref3.astype(jnp.float32),
                        atol=2e-2, rtol=2e-2), "mismatch (3-input bf16)"

    print("KERNEL_OK")
</pallas_src>

<mosaic_0001>
module attributes {stable_mosaic.version = 11 : i64} {
  func.func @_fusion_kernel(%arg0: i32, %arg1: memref<2xf32, #tpu.memory_space<smem>>, %arg2: memref<8x256xf32, #tpu.memory_space<vmem>>, %arg3: memref<8x256xf32, #tpu.memory_space<vmem>>, %arg4: memref<8x256xf32, #tpu.memory_space<vmem>>) attributes {dimension_semantics = [#tpu.dimension_semantics<parallel>], iteration_bounds = array<i64: 1>, scalar_prefetch = 0 : i64, scratch_operands = 0 : i64, tpu.core_type = #tpu.core_type<tc>, window_params = [{transform_indices = @transform_0, window_bounds = array<i64: 2>}, {transform_indices = @transform_1, window_bounds = array<i64: 8, 256>}, {transform_indices = @transform_2, window_bounds = array<i64: 8, 256>}, {transform_indices = @transform_3, window_bounds = array<i64: 8, 256>}]} {
    %c0 = arith.constant 0 : index
    %0 = memref.load %arg1[%c0] : memref<2xf32, #tpu.memory_space<smem>>
    %c0_0 = arith.constant 0 : index
    %c0_1 = arith.constant 0 : index
    %1 = vector.load %arg2[%c0_0, %c0_1] : memref<8x256xf32, #tpu.memory_space<vmem>>, vector<8x256xf32>
    %2 = vector.broadcast %0 : f32 to vector<8x256xf32>
    %3 = arith.mulf %2, %1 : vector<8x256xf32>
    %c1 = arith.constant 1 : index
    %4 = memref.load %arg1[%c1] : memref<2xf32, #tpu.memory_space<smem>>
    %c0_2 = arith.constant 0 : index
    %c0_3 = arith.constant 0 : index
    %5 = vector.load %arg3[%c0_2, %c0_3] : memref<8x256xf32, #tpu.memory_space<vmem>>, vector<8x256xf32>
    %6 = vector.broadcast %4 : f32 to vector<8x256xf32>
    %7 = arith.mulf %6, %5 : vector<8x256xf32>
    %8 = arith.addf %3, %7 : vector<8x256xf32>
    %c0_4 = arith.constant 0 : index
    %c0_5 = arith.constant 0 : index
    %9 = vector.load %arg4[%c0_4, %c0_5] : memref<8x256xf32, #tpu.memory_space<vmem>>, vector<8x256xf32>
    tpu.vector_store %arg4[%c0_4, %c0_5], %8 {strides = array<i32>} : memref<8x256xf32, #tpu.memory_space<vmem>>, vector<8x256xf32>,
    return
  }
  func.func @transform_0(%arg0: i32) -> i32 {
    %c0_i32 = arith.constant 0 : i32
    %c0_i32_0 = arith.constant 0 : i32
    return %c0_i32 : i32
  }
  func.func @transform_1(%arg0: i32) -> (i32, i32) {
    %c0_i32 = arith.constant 0 : i32
    %c0_i32_0 = arith.constant 0 : i32
    return %arg0, %c0_i32 : i32, i32
  }
  func.func @transform_2(%arg0: i32) -> (i32, i32) {
    %c0_i32 = arith.constant 0 : i32
    %c0_i32_0 = arith.constant 0 : i32
    return %arg0, %c0_i32 : i32, i32
  }
  func.func @transform_3(%arg0: i32) -> (i32, i32) {
    %c0_i32 = arith.constant 0 : i32
    %c0_i32_0 = arith.constant 0 : i32
    return %arg0, %c0_i32 : i32, i32
  }
}

</mosaic_0001>

<bundles_post_ra>
// kernel: tpu_custom_call.1
= control target key start
LH: loop header
LB: loop body
LE: loop exit
PB: predicated region body
PF: predicated region fallthrough
CT: control target
= control target key end

     0   :  { %8 = vsyncpa [#allocation5], 0  ;;  %s244_s0 = inlined_call_operand.hbm [shape: f32[2], index: 0, kind: input, shape index: {}]   ;;  %s245_s1 = inlined_call_operand.hbm [shape: f32[8,256], index: 1, kind: input, shape index: {}]   ;;  %s246_s2 = inlined_call_operand.hbm [shape: f32[8,256], index: 2, kind: input, shape index: {}]   ;;  %s247_s3 = inlined_call_operand.hbm [shape: f32[8,256], index: 3, kind: output, shape index: {}]  }
   0x1   :  { %9 = vsyncpa [#allocation3], 0 }
   0x2   :  { %10 = vsyncpa [#allocation8], 0 }
   0x3   :  { %11 = vsyncpa [#allocation4], 0  ;;  %s88_s14 = scalar_lea.hbm %s244_s0, 16 }
   0x4   :  { %p89_p0 = scmp.ne.s32.totalorder %s244_s0, %s88_s14  ;;  %p92_p1 = scmp.lt.u32.totalorder %s88_s14, %s244_s0 }
   0x6   :  { %p94_p2 = pnand %p92_p1, %p89_p0 }
   0x8   :  { %97 = shalt.err (!%p94_p2)
}
   0x9   :  { %s172_s19 = smov [#allocation2]   ;;  %s173_s22 = smov [#allocation6]  }
   0xa   :  { %19 = dma.hbm_to_smem %s244_s0, 16, %s172_s19, [#allocation5]  }
   0xb   :  { %s26_s23 = sshll.u32 %s173_s22, 4  ;;  %s174_s24 = smov [#allocation7]   ;;  %s27_s23 = int_to_ptr.vmem [resolvable:$true] %s26_s23 }
   0xc   :  { %s36_s25 = sshll.u32 %s174_s24, 4  ;;  %s98_s28 = scalar_lea.hbm %s245_s1, 256  ;;  %s37_s25 = int_to_ptr.vmem [resolvable:$true] %s36_s25 }
   0xd   :  { %p99_p3 = scmp.ne.s32.totalorder %s245_s1, %s98_s28  ;;  %p102_p4 = scmp.lt.u32.totalorder %s98_s28, %s245_s1 }
   0xf   :  { %p104_p5 = pnand %p102_p4, %p99_p3 }
  0x11   :  { %107 = shalt.err (!%p104_p5)
}
  0x12   :  { %s108_s0 = scalar_lea.vmem %s27_s23, 256  ;;  %p113_p7 = scmp.lt.s32.totalorder %s27_s23, %s27_s23 }
  0x13   :  { %p109_p6 = scmp.ne.s32.totalorder %s27_s23, %s108_s0  ;;  %p114_p8 = scmp.lt.s32.totalorder %s108_s0, %s108_s0 }
  0x15   :  { %p115_p9 = por %p114_p8, %p113_p7 }
  0x17   :  { %p116_p10 = pnand %p115_p9, %p109_p6 }
  0x19   :  { %119 = shalt.err (!%p116_p10)
}
  0x1a   :  { %29 = dma.hbm_to_vmem [thread:$0]  %s245_s1, 256, %s27_s23, [#allocation3]  }
  0x1b   :  { %s120_s10 = scalar_lea.hbm %s246_s2, 256 }
  0x1c   :  { %p121_p11 = scmp.ne.s32.totalorder %s246_s2, %s120_s10  ;;  %p124_p12 = scmp.lt.u32.totalorder %s120_s10, %s246_s2 }
  0x1e   :  { %p126_p13 = pnand %p124_p12, %p121_p11 }
  0x20   :  { %129 = shalt.err (!%p126_p13)
}
  0x21   :  { %s130_s15 = scalar_lea.vmem %s37_s25, 256  ;;  %p135_p1 = scmp.lt.s32.totalorder %s37_s25, %s37_s25 }
  0x22   :  { %p131_p0 = scmp.ne.s32.totalorder %s37_s25, %s130_s15  ;;  %p136_p2 = scmp.lt.s32.totalorder %s130_s15, %s130_s15 }
  0x24   :  { %p137_p3 = por %p136_p2, %p135_p1 }
  0x26   :  { %p138_p4 = pnand %p137_p3, %p131_p0 }
  0x28   :  { %141 = shalt.err (!%p138_p4)
}
  0x29   :  { %39 = dma.hbm_to_vmem [thread:$0]  %s246_s2, 256, %s37_s25, [#allocation8]  }
  0x2a   :  { %164 = dma.done.wait [#allocation5], 16  }
  0x2b   :  { %165 = vsyncadd [#allocation5], 4294967280 }
  0x2c   :  { %166 = dma.done.wait [#allocation3], 256  }
  0x2d   :  { %167 = vsyncadd [#allocation3], 4294967040 }
  0x2e   :  { %168 = dma.done.wait [#allocation8], 256  }
  0x2f   :  { %169 = vsyncadd [#allocation8], 4294967040 }
  0x30   :  { %49 = sfence }
  0x31   :  { %s50_s17 = sld [smem:[#allocation2]]  ;;  %s83_s18 = sld [smem:[#allocation2 + $0x1]]  ;;  %v51_v0 = vld [vmem:[#allocation6] sm:$0xff]  ;;  %v57_v1 = vld [vmem:[#allocation7] sm:$0xff]  ;;  %v52_v2 = vld [vmem:[#allocation6 + $0x8] sm:$0xff] }
  0x32   :  { %v58_v3 = vld [vmem:[#allocation7 + $0x8] sm:$0xff]  ;;  %s175_s19 = smov [#allocation9]  }
  0x33   :  { %s72_s20 = sshll.u32 %s175_s19, 4  ;;  %s73_s20 = int_to_ptr.vmem [resolvable:$true] %s72_s20 }
  0x34   :  { %s142_s2 = scalar_lea.vmem %s73_s20, 256  ;;  %p147_p6 = scmp.lt.s32.totalorder %s73_s20, %s73_s20 }
  0x35   :  { %p143_p5 = scmp.ne.s32.totalorder %s73_s20, %s142_s2  ;;  %p148_p7 = scmp.lt.s32.totalorder %s142_s2, %s142_s2 }
  0x37   :  { %v53_v4 = vstv %s50_s17  ;;  %v59_v5 = vstv %s83_s18  ;;  %p149_p8 = por %p148_p7, %p147_p6 }
  0x38   :  { %v54_v6 = vmul.f32 %v53_v4, %v51_v0  ;;  %v60_v7 = vmul.f32 %v59_v5, %v57_v1  ;;  %v55_v8 = vmul.f32 %v53_v4, %v52_v2  ;;  %v61_v9 = vmul.f32 %v59_v5, %v58_v3 }
  0x39   :  { %p150_p9 = pnand %p149_p8, %p143_p5 }
  0x3a   :  { %v62_v10 = vadd.f32 %v60_v7, %v54_v6  ;;  %v63_v11 = vadd.f32 %v61_v9, %v55_v8 }
  0x3c   :  { %64 = vst [vmem:[#allocation9] sm:$0xff] %v62_v10  ;;  %65 = vst [vmem:[#allocation9 + $0x8] sm:$0xff] %v63_v11 }
  0x3d   :  { %153 = shalt.err (!%p150_p9)
}
  0x3e   :  { %s154_s23 = scalar_lea.hbm %s247_s3, 256 }
  0x3f   :  { %p155_p10 = scmp.ne.s32.totalorder %s247_s3, %s154_s23  ;;  %p158_p11 = scmp.lt.u32.totalorder %s154_s23, %s247_s3 }
  0x41   :  { %p160_p12 = pnand %p158_p11, %p155_p10 }
  0x43   :  { %163 = shalt.err (!%p160_p12)
}
  0x44   :  { %75 = dma.vmem_to_hbm [thread:$0]  %s73_s20, 256, %s247_s3, [#allocation4]  }
  0x45   :  { %170 = dma.done.wait [#allocation4], 256  }
  0x46   :  { %171 = vsyncadd [#allocation4], 4294967040 }
  0x47   :  { %79 = vsyncpa [#allocation3], 1 }
  0x48   :  { %80 = vsyncpa [#allocation8], 1 }
  0x49   :  { %81 = vsyncpa [#allocation4], 1 }
  0x4a   :  { %82 = vsyncpa [#allocation5], 1 }

</bundles_post_ra>
